<compile_context>
chip_gen: v5e
topology: v5e:2x2
jax: 0.10.0
libtpu: 0.0.40
codegen_flags: <defaults>
</compile_context>

<pallas_src>
import math

import jax
import jax.numpy as jnp
from jax.experimental import pallas as pl
from jax.experimental.pallas import tpu as pltpu


def _identity_copy_kernel(x_ref, o_ref):
    # Pure pass-through: copy the current (tile_rows, cols) tile.
    o_ref[...] = x_ref[...]


def _sublane_quantum(dtype) -> int:
    # Sublane packing quantum: 8 rows for 4-byte, 16 for 2-byte, 32 for 1-byte dtypes.
    return {4: 8, 2: 16, 1: 32}.get(jnp.dtype(dtype).itemsize, 8)


def apriel_hybrid_identity(hidden_states: jax.Array) -> tuple[jax.Array]:
    """Faithful (zero-cost) equivalent of AprielHybridIdentity.forward.

    The PyTorch module returns its input tensor unchanged, so the fastest correct
    implementation moves no bytes at all.
    """
    return (hidden_states,)


def apriel_hybrid_identity_pallas(
    hidden_states: jax.Array, *, donate: bool = False
) -> tuple[jax.Array]:
    """Materializing Pallas identity copy (only when an explicit copy is required).

    Args:
      hidden_states: arbitrary-rank array, e.g. [B, S, H].
      donate: if True, the caller is donating the input buffer; in that case a
        materialized copy is pointless (it would read+write the same bytes), so
        we short-circuit and return the input unchanged (zero-cost).
    Returns:
      A 1-tuple with an array equal to `hidden_states`.
    """
    if donate:
        # Aliased copy == no-op with 2x HBM traffic; skip it entirely.
        return (hidden_states,)

    orig_shape = hidden_states.shape
    dtype = hidden_states.dtype
    itemsize = jnp.dtype(dtype).itemsize
    total = math.prod(orig_shape) if orig_shape else 1

    # Degenerate cases: scalar or empty tensor — identity without a kernel.
    if hidden_states.ndim == 0 or total == 0:
        return (hidden_states,)

    # Layout-preserving collapse of leading dims only: [..., H] -> [R, H].
    # Never fold across the minor dim (avoids hidden XLA relayout copies).
    cols = orig_shape[-1]
    rows = total // cols
    x2d = hidden_states.reshape(rows, cols)

    # Row-tile sizing: ~4 MiB per block -> ~16 MiB with double-buffered in+out,
    # safe on v5e/v6e (128 MiB physical VMEM) and v7x (64 MiB/TC) with the
    # explicit 32 MiB scoped-VMEM limit below.
    quantum = _sublane_quantum(dtype)
    target_block_bytes = 4 * 1024 * 1024
    row_bytes = max(cols * itemsize, 1)
    rows_per_block = max(1, target_block_bytes // row_bytes)
    rows_per_block = max(quantum, (rows_per_block // quantum) * quantum)
    tile_rows = rows if rows <= rows_per_block else rows_per_block

    grid = (pl.cdiv(rows, tile_rows),)

    out2d = pl.pallas_call(
        _identity_copy_kernel,
        out_shape=jax.ShapeDtypeStruct((rows, cols), dtype),
        grid=grid,
        in_specs=[pl.BlockSpec((tile_rows, cols), lambda i: (i, 0))],
        out_specs=pl.BlockSpec((tile_rows, cols), lambda i: (i, 0)),
        compiler_params=pltpu.CompilerParams(
            dimension_semantics=("parallel",),
            vmem_limit_bytes=32 * 1024 * 1024,
        ),
        cost_estimate=pl.CostEstimate(
            flops=0, transcendentals=0, bytes_accessed=2 * total * itemsize
        ),
    )(x2d)

    return (out2d.reshape(orig_shape),)


if __name__ == "__main__":
    key = jax.random.PRNGKey(0)

    # Small shapes consistent with a hybrid-LLM hidden state: [batch, seq, hidden]
    B, S, H = 2, 8, 32
    hidden_states = jax.random.normal(key, (B, S, H), dtype=jnp.float32)

    # 1) Hot path: true identity, zero bytes moved (same object returned).
    (out_fast,) = apriel_hybrid_identity(hidden_states)
    assert out_fast is hidden_states

    # 2) Explicit-copy path (non-lane-dense H=32: full-extent last dim, masked vst).
    (out_copy,) = apriel_hybrid_identity_pallas(hidden_states)
    jax.block_until_ready(out_copy)
    assert out_copy.shape == hidden_states.shape
    assert out_copy.dtype == hidden_states.dtype
    assert bool(jnp.array_equal(out_copy, hidden_states))

    # 3) Explicit-copy path with a lane-dense hidden dim (H multiple of 128).
    key2 = jax.random.PRNGKey(0)
    hs_dense = jax.random.normal(key2, (2, 8, 256), dtype=jnp.bfloat16)
    (out_dense,) = apriel_hybrid_identity_pallas(hs_dense)
    jax.block_until_ready(out_dense)
    assert out_dense.shape == hs_dense.shape
    assert out_dense.dtype == hs_dense.dtype
    assert bool(jnp.array_equal(out_dense, hs_dense))

    # 4) Donated-buffer path short-circuits to the zero-cost identity.
    (out_donated,) = apriel_hybrid_identity_pallas(hidden_states, donate=True)
    assert out_donated is hidden_states

    print("KERNEL_OK")
</pallas_src>

<mosaic_0001>
module attributes {stable_mosaic.version = 11 : i64} {
  func.func @_identity_copy_kernel(%arg0: i32, %arg1: memref<16x32xf32, #tpu.memory_space<vmem>>, %arg2: memref<16x32xf32, #tpu.memory_space<vmem>>) attributes {dimension_semantics = [#tpu.dimension_semantics<parallel>], iteration_bounds = array<i64: 1>, scalar_prefetch = 0 : i64, scratch_operands = 0 : i64, tpu.core_type = #tpu.core_type<tc>, window_params = [{transform_indices = @transform_0, window_bounds = array<i64: 16, 32>}, {transform_indices = @transform_1, window_bounds = array<i64: 16, 32>}]} {
    %c0 = arith.constant 0 : index
    %c0_0 = arith.constant 0 : index
    %0 = vector.load %arg1[%c0, %c0_0] : memref<16x32xf32, #tpu.memory_space<vmem>>, vector<16x32xf32>
    %c0_1 = arith.constant 0 : index
    %c0_2 = arith.constant 0 : index
    %1 = vector.load %arg2[%c0_1, %c0_2] : memref<16x32xf32, #tpu.memory_space<vmem>>, vector<16x32xf32>
    tpu.vector_store %arg2[%c0_1, %c0_2], %0 {strides = array<i32>} : memref<16x32xf32, #tpu.memory_space<vmem>>, vector<16x32xf32>,
    return
  }
  func.func @transform_0(%arg0: i32) -> (i32, i32) {
    %c0_i32 = arith.constant 0 : i32
    %c0_i32_0 = arith.constant 0 : i32
    return %arg0, %c0_i32 : i32, i32
  }
  func.func @transform_1(%arg0: i32) -> (i32, i32) {
    %c0_i32 = arith.constant 0 : i32
    %c0_i32_0 = arith.constant 0 : i32
    return %arg0, %c0_i32 : i32, i32
  }
}

</mosaic_0001>

<bundles_post_ra>
// kernel: tpu_custom_call.1
= control target key start
LH: loop header
LB: loop body
LE: loop exit
PB: predicated region body
PF: predicated region fallthrough
CT: control target
= control target key end

     0   :  { %6 = vsyncpa [#allocation3], 0  ;;  %s125_s0 = inlined_call_operand.hbm [shape: f32[16,32], index: 0, kind: input, shape index: {}]   ;;  %s126_s1 = inlined_call_operand.hbm [shape: f32[16,32], index: 1, kind: output, shape index: {}]  }
   0x1   :  { %7 = vsyncpa [#allocation4], 0  ;;  %s12_s8 = sshll.u32 %s125_s0, 4  ;;  %s105_s9 = smov [#allocation2]   ;;  %s13_s8 = int_to_ptr.hbm [resolvable:$true] %s12_s8 }
   0x2   :  { %s14_s10 = sshll.u32 %s105_s9, 4  ;;  %s106_s11 = smov 128   ;;  %s15_s10 = int_to_ptr.vmem [resolvable:$true] %s14_s10 }
   0x3   :  { %s107_s12 = smov 8  }
   0x4   :  { %20 = dma.hbm_to_vmem [thread:$0]  %s13_s8, 256, %s15_s10, [#allocation3], %s106_s11, %s106_s11, %s107_s12  }
   0x5   :  { %101 = dma.done.wait [#allocation3], 256  }
   0x6   :  { %102 = vsyncadd [#allocation3], 4294967040  ;;  %s108_s13 = smov [#allocation5]   ;;  %s36_s17 = sshll.u32 %s126_s1, 4  ;;  %vm27_vm0 = vcmask 261120   ;;  %v25_v0 = vld [vmem:[#allocation2] sm:$0xff]  ;;  %s37_s17 = int_to_ptr.hbm [resolvable:$true] %s36_s17 }
   0x7   :  { %s34_s14 = sshll.u32 %s108_s13, 4  ;;  %v26_v1 = vld [vmem:[#allocation2 + $0x8] sm:$0xff]  ;;  %28 = vst.msk [vmem:[#allocation5] sm:$0xff] %vm27_vm0, %v25_v0  ;;  %s35_s14 = int_to_ptr.vmem [resolvable:$true] %s34_s14 }
   0x8   :  { %29 = vst.msk [vmem:[#allocation5 + $0x8] sm:$0xff] %vm27_vm0, %v26_v1 }
   0x9   :  { %42 = dma.vmem_to_hbm [thread:$0]  %s35_s14, 256, %s37_s17, [#allocation4], %s106_s11, %s106_s11, %s107_s12  }
   0xa   :  { %103 = dma.done.wait [#allocation4], 256  }
   0xb   :  { %104 = vsyncadd [#allocation4], 4294967040 }
   0xc   :  { %47 = vsyncpa [#allocation3], 1 }
   0xd   :  { %48 = vsyncpa [#allocation4], 1 }

</bundles_post_ra>
